<compile_context>
chip_gen: v7x
topology: tpu7x:2x2x1
jax: 0.10.0
libtpu: 0.0.40
codegen_flags: <defaults>
</compile_context>

<pallas_src>
import functools

import jax
import jax.numpy as jnp
from jax.experimental import pallas as pl
from jax.experimental.pallas import tpu as pltpu


def _mag_kernel(
    text_ref,    # (TM, Dt)
    img_ref,     # (TM, Di)
    wt_ref,      # (Dt, H)   text_proj weight (stored (in, out))
    bt_ref,      # (1, H)
    wi_ref,      # (Di, H)   img_proj weight
    bi_ref,      # (1, H)
    wg_t_ref,    # (H, H)    gate weight rows acting on text_proj
    wg_i_ref,    # (H, H)    gate weight rows acting on img_proj
    bg_ref,      # (1, H)
    wf_ref,      # (H, Dt)   fusion weight
    bf_ref,      # (1, Dt)
    gamma_ref,   # (1, Dt)   LayerNorm weight
    beta_ref,    # (1, Dt)   LayerNorm bias
    out_ref,     # (TM, Dt)
    *,
    eps: float,
):
    # Activations stay in native dtype for the MXU; accumulate in f32.
    text = text_ref[...]
    img = img_ref[...]

    # Load biases / LN params once, cast once (f32 epilogue math).
    bt = bt_ref[...].astype(jnp.float32)
    bi = bi_ref[...].astype(jnp.float32)
    bg = bg_ref[...].astype(jnp.float32)
    bf = bf_ref[...].astype(jnp.float32)
    gamma = gamma_ref[...].astype(jnp.float32)
    beta = beta_ref[...].astype(jnp.float32)

    # text_proj = text @ Wt + bt ; img_proj = img @ Wi + bi
    text_proj = jnp.dot(text, wt_ref[...], preferred_element_type=jnp.float32) + bt
    img_proj = jnp.dot(img, wi_ref[...], preferred_element_type=jnp.float32) + bi

    # gate = sigmoid(cat([tp, ip], -1) @ Wg + bg)
    #      = sigmoid(tp @ Wg_t + ip @ Wg_i + bg)   (weights pre-split in the wrapper)
    w_dt = wg_t_ref.dtype
    gate_pre = (
        jnp.dot(text_proj.astype(w_dt), wg_t_ref[...], preferred_element_type=jnp.float32)
        + jnp.dot(img_proj.astype(w_dt), wg_i_ref[...], preferred_element_type=jnp.float32)
        + bg
    )
    gate = jax.nn.sigmoid(gate_pre)  # transcendental -> EUP slot

    # fused = (gate * img_proj) @ Wf + bf
    gated = (gate * img_proj).astype(wf_ref.dtype)
    fused = jnp.dot(gated, wf_ref[...], preferred_element_type=jnp.float32) + bf

    # LayerNorm(text + fused) over the feature axis (population variance, like torch).
    x = text.astype(jnp.float32) + fused
    mu = jnp.mean(x, axis=-1, keepdims=True)
    xc = x - mu
    var = jnp.mean(xc * xc, axis=-1, keepdims=True)
    y = xc * jax.lax.rsqrt(var + eps) * gamma + beta

    out_ref[...] = y.astype(out_ref.dtype)


def mag_forward(text, img, params, *, row_tile=256, eps=1e-5):
    """text: [B, S, Dt], img: [B, S, Di] -> [B, S, Dt]."""
    B, S, Dt = text.shape
    Di = img.shape[-1]
    H = params["wt"].shape[1]
    N = B * S

    # Sublane granularity: 8 rows for 32-bit inputs, 16 for bf16.
    sub = 16 if text.dtype == jnp.bfloat16 else 8
    tm = max(sub, min(int(row_tile), pl.cdiv(N, sub) * sub))
    tm = pl.cdiv(tm, sub) * sub
    n_pad = pl.cdiv(N, tm) * tm

    text2 = text.reshape(N, Dt)
    img2 = img.reshape(N, Di)
    if n_pad != N:
        text2 = jnp.pad(text2, ((0, n_pad - N), (0, 0)))
        img2 = jnp.pad(img2, ((0, n_pad - N), (0, 0)))

    # Pre-split the gate weight so the kernel never slices a loaded value.
    wg_t = params["wg"][:H, :]
    wg_i = params["wg"][H:, :]
    weights = (
        params["wt"], params["bt"], params["wi"], params["bi"],
        wg_t, wg_i, params["bg"], params["wf"], params["bf"],
        params["gamma"], params["beta"],
    )

    row_spec_t = pl.BlockSpec((tm, Dt), lambda i: (i, 0))
    row_spec_i = pl.BlockSpec((tm, Di), lambda i: (i, 0))

    def full(arr):
        return pl.BlockSpec(arr.shape, lambda i: (0, 0))

    # VMEM budget: double-buffered activation tiles + resident params + f32 temps.
    itemsize = jnp.dtype(text.dtype).itemsize
    act_bytes = 2 * tm * (2 * Dt + Di) * itemsize
    param_bytes = sum(int(w.size) * w.dtype.itemsize for w in weights)
    tmp_bytes = tm * (4 * H + 3 * Dt) * 4
    vmem_limit = int(min(2 * (act_bytes + param_bytes + tmp_bytes) + (4 << 20), 48 << 20))

    kernel = functools.partial(_mag_kernel, eps=eps)

    out2 = pl.pallas_call(
        kernel,
        out_shape=jax.ShapeDtypeStruct((n_pad, Dt), text.dtype),
        grid_spec=pltpu.PrefetchScalarGridSpec(
            num_scalar_prefetch=0,
            grid=(n_pad // tm,),
            in_specs=[row_spec_t, row_spec_i] + [full(w) for w in weights],
            out_specs=row_spec_t,
        ),
        compiler_params=pltpu.CompilerParams(
            dimension_semantics=("parallel",),
            vmem_limit_bytes=vmem_limit,
        ),
    )(text2, img2, *weights)

    return out2[:N].reshape(B, S, Dt)


def init_params(key, text_dim, img_dim, hidden_dim, dtype=jnp.float32):
    """Deterministic synthetic params. Linear weights stored as (in, out)."""
    ks = jax.random.split(key, 8)

    def lin(kw, kb, fan_in, fan_out):
        # torch.nn.Linear default init: U(-1/sqrt(fan_in), 1/sqrt(fan_in))
        bound = 1.0 / jnp.sqrt(fan_in)
        w = jax.random.uniform(kw, (fan_in, fan_out), dtype, -bound, bound)
        b = jax.random.uniform(kb, (1, fan_out), dtype, -bound, bound)
        return w, b

    wt, bt = lin(ks[0], ks[1], text_dim, hidden_dim)
    wi, bi = lin(ks[2], ks[3], img_dim, hidden_dim)
    wg, bg = lin(ks[4], ks[5], 2 * hidden_dim, hidden_dim)
    wf, bf = lin(ks[6], ks[7], hidden_dim, text_dim)
    gamma = jnp.ones((1, text_dim), dtype)
    beta = jnp.zeros((1, text_dim), dtype)
    return dict(wt=wt, bt=bt, wi=wi, bi=bi, wg=wg, bg=bg,
                wf=wf, bf=bf, gamma=gamma, beta=beta)


def mag_reference(text, img, params, eps=1e-5):
    """Pure-JAX reference (mirrors the PyTorch forward)."""
    tp = text @ params["wt"] + params["bt"]
    ip = img @ params["wi"] + params["bi"]
    gate = jax.nn.sigmoid(jnp.concatenate([tp, ip], axis=-1) @ params["wg"] + params["bg"])
    fused = (gate * ip) @ params["wf"] + params["bf"]
    x = text + fused
    mu = jnp.mean(x, axis=-1, keepdims=True)
    var = jnp.mean((x - mu) ** 2, axis=-1, keepdims=True)
    return (x - mu) / jnp.sqrt(var + eps) * params["gamma"] + params["beta"]


if __name__ == "__main__":
    B, S = 2, 8
    TEXT_DIM, IMG_DIM, HIDDEN_DIM = 32, 48, 32

    key = jax.random.PRNGKey(0)
    k_text, k_img, k_params = jax.random.split(key, 3)

    text = jax.random.normal(k_text, (B, S, TEXT_DIM), jnp.float32)
    img = jax.random.normal(k_img, (B, S, IMG_DIM), jnp.float32)
    params = init_params(k_params, TEXT_DIM, IMG_DIM, HIDDEN_DIM)

    out = mag_forward(text, img, params)
    out = jax.block_until_ready(out)

    ref = mag_reference(text, img, params)
    assert out.shape == (B, S, TEXT_DIM)
    assert jnp.allclose(out, ref, atol=1e-4, rtol=1e-4), "mismatch vs reference"

    print("KERNEL_OK")
</pallas_src>

<mosaic_0001>
module attributes {stable_mosaic.version = 11 : i64} {
  func.func @_mag_kernel(%arg0: i32, %arg1: memref<16x32xf32, #tpu.memory_space<vmem>>, %arg2: memref<16x48xf32, #tpu.memory_space<vmem>>, %arg3: memref<32x32xf32, #tpu.memory_space<vmem>>, %arg4: memref<1x32xf32, #tpu.memory_space<vmem>>, %arg5: memref<48x32xf32, #tpu.memory_space<vmem>>, %arg6: memref<1x32xf32, #tpu.memory_space<vmem>>, %arg7: memref<32x32xf32, #tpu.memory_space<vmem>>, %arg8: memref<32x32xf32, #tpu.memory_space<vmem>>, %arg9: memref<1x32xf32, #tpu.memory_space<vmem>>, %arg10: memref<32x32xf32, #tpu.memory_space<vmem>>, %arg11: memref<1x32xf32, #tpu.memory_space<vmem>>, %arg12: memref<1x32xf32, #tpu.memory_space<vmem>>, %arg13: memref<1x32xf32, #tpu.memory_space<vmem>>, %arg14: memref<16x32xf32, #tpu.memory_space<vmem>>) attributes {dimension_semantics = [#tpu.dimension_semantics<parallel>], iteration_bounds = array<i64: 1>, scalar_prefetch = 0 : i64, scratch_operands = 0 : i64, tpu.core_type = #tpu.core_type<tc>, window_params = [{transform_indices = @transform_0, window_bounds = array<i64: 16, 32>}, {transform_indices = @transform_1, window_bounds = array<i64: 16, 48>}, {pipeline_mode = #tpu.pipeline_mode<synchronous>, transform_indices = @transform_2, window_bounds = array<i64: 32, 32>}, {pipeline_mode = #tpu.pipeline_mode<synchronous>, transform_indices = @transform_3, window_bounds = array<i64: 1, 32>}, {pipeline_mode = #tpu.pipeline_mode<synchronous>, transform_indices = @transform_4, window_bounds = array<i64: 48, 32>}, {pipeline_mode = #tpu.pipeline_mode<synchronous>, transform_indices = @transform_5, window_bounds = array<i64: 1, 32>}, {pipeline_mode = #tpu.pipeline_mode<synchronous>, transform_indices = @transform_6, window_bounds = array<i64: 32, 32>}, {pipeline_mode = #tpu.pipeline_mode<synchronous>, transform_indices = @transform_7, window_bounds = array<i64: 32, 32>}, {pipeline_mode = #tpu.pipeline_mode<synchronous>, transform_indices = @transform_8, window_bounds = array<i64: 1, 32>}, {pipeline_mode = #tpu.pipeline_mode<synchronous>, transform_indices = @transform_9, window_bounds = array<i64: 32, 32>}, {pipeline_mode = #tpu.pipeline_mode<synchronous>, transform_indices = @transform_10, window_bounds = array<i64: 1, 32>}, {pipeline_mode = #tpu.pipeline_mode<synchronous>, transform_indices = @transform_11, window_bounds = array<i64: 1, 32>}, {pipeline_mode = #tpu.pipeline_mode<synchronous>, transform_indices = @transform_12, window_bounds = array<i64: 1, 32>}, {transform_indices = @transform_13, window_bounds = array<i64: 16, 32>}]} {
    %c0 = arith.constant 0 : index
    %c0_0 = arith.constant 0 : index
    %0 = vector.load %arg1[%c0, %c0_0] : memref<16x32xf32, #tpu.memory_space<vmem>>, vector<16x32xf32>
    %c0_1 = arith.constant 0 : index
    %c0_2 = arith.constant 0 : index
    %1 = vector.load %arg2[%c0_1, %c0_2] : memref<16x48xf32, #tpu.memory_space<vmem>>, vector<16x48xf32>
    %c0_3 = arith.constant 0 : index
    %c0_4 = arith.constant 0 : index
    %2 = vector.load %arg4[%c0_3, %c0_4] : memref<1x32xf32, #tpu.memory_space<vmem>>, vector<1x32xf32>
    %c0_5 = arith.constant 0 : index
    %c0_6 = arith.constant 0 : index
    %3 = vector.load %arg6[%c0_5, %c0_6] : memref<1x32xf32, #tpu.memory_space<vmem>>, vector<1x32xf32>
    %c0_7 = arith.constant 0 : index
    %c0_8 = arith.constant 0 : index
    %4 = vector.load %arg9[%c0_7, %c0_8] : memref<1x32xf32, #tpu.memory_space<vmem>>, vector<1x32xf32>
    %c0_9 = arith.constant 0 : index
    %c0_10 = arith.constant 0 : index
    %5 = vector.load %arg11[%c0_9, %c0_10] : memref<1x32xf32, #tpu.memory_space<vmem>>, vector<1x32xf32>
    %c0_11 = arith.constant 0 : index
    %c0_12 = arith.constant 0 : index
    %6 = vector.load %arg12[%c0_11, %c0_12] : memref<1x32xf32, #tpu.memory_space<vmem>>, vector<1x32xf32>
    %c0_13 = arith.constant 0 : index
    %c0_14 = arith.constant 0 : index
    %7 = vector.load %arg13[%c0_13, %c0_14] : memref<1x32xf32, #tpu.memory_space<vmem>>, vector<1x32xf32>
    %c0_15 = arith.constant 0 : index
    %c0_16 = arith.constant 0 : index
    %8 = vector.load %arg3[%c0_15, %c0_16] : memref<32x32xf32, #tpu.memory_space<vmem>>, vector<32x32xf32>
    %cst = arith.constant dense<0.000000e+00> : vector<16x32xf32>
    %9 = tpu.matmul %0, %8, %cst {dimension_numbers = #tpu.dot_dimension_numbers<[1], [0], [0], [1], [0, 0, 1, 1], [], []>} : vector<16x32xf32>, vector<32x32xf32>, vector<16x32xf32> -> vector<16x32xf32>
    %10 = vector.broadcast %2 : vector<1x32xf32> to vector<16x32xf32>
    %11 = arith.addf %9, %10 : vector<16x32xf32>
    %c0_17 = arith.constant 0 : index
    %c0_18 = arith.constant 0 : index
    %12 = vector.load %arg5[%c0_17, %c0_18] : memref<48x32xf32, #tpu.memory_space<vmem>>, vector<48x32xf32>
    %cst_19 = arith.constant dense<0.000000e+00> : vector<16x32xf32>
    %13 = tpu.matmul %1, %12, %cst_19 {dimension_numbers = #tpu.dot_dimension_numbers<[1], [0], [0], [1], [0, 0, 1, 1], [], []>} : vector<16x48xf32>, vector<48x32xf32>, vector<16x32xf32> -> vector<16x32xf32>
    %14 = vector.broadcast %3 : vector<1x32xf32> to vector<16x32xf32>
    %15 = arith.addf %13, %14 : vector<16x32xf32>
    %c0_20 = arith.constant 0 : index
    %c0_21 = arith.constant 0 : index
    %16 = vector.load %arg7[%c0_20, %c0_21] : memref<32x32xf32, #tpu.memory_space<vmem>>, vector<32x32xf32>
    %cst_22 = arith.constant dense<0.000000e+00> : vector<16x32xf32>
    %17 = tpu.matmul %11, %16, %cst_22 {dimension_numbers = #tpu.dot_dimension_numbers<[1], [0], [0], [1], [0, 0, 1, 1], [], []>} : vector<16x32xf32>, vector<32x32xf32>, vector<16x32xf32> -> vector<16x32xf32>
    %c0_23 = arith.constant 0 : index
    %c0_24 = arith.constant 0 : index
    %18 = vector.load %arg8[%c0_23, %c0_24] : memref<32x32xf32, #tpu.memory_space<vmem>>, vector<32x32xf32>
    %cst_25 = arith.constant dense<0.000000e+00> : vector<16x32xf32>
    %19 = tpu.matmul %15, %18, %cst_25 {dimension_numbers = #tpu.dot_dimension_numbers<[1], [0], [0], [1], [0, 0, 1, 1], [], []>} : vector<16x32xf32>, vector<32x32xf32>, vector<16x32xf32> -> vector<16x32xf32>
    %20 = arith.addf %17, %19 : vector<16x32xf32>
    %21 = vector.broadcast %4 : vector<1x32xf32> to vector<16x32xf32>
    %22 = arith.addf %20, %21 : vector<16x32xf32>
    %23 = arith.negf %22 : vector<16x32xf32>
    %24 = math.exp %23 : vector<16x32xf32>
    %cst_26 = arith.constant 1.000000e+00 : f32
    %25 = vector.broadcast %cst_26 : f32 to vector<16x32xf32>
    %26 = arith.addf %25, %24 : vector<16x32xf32>
    %27 = arith.divf %25, %26 : vector<16x32xf32>
    %28 = arith.mulf %27, %15 : vector<16x32xf32>
    %c0_27 = arith.constant 0 : index
    %c0_28 = arith.constant 0 : index
    %29 = vector.load %arg10[%c0_27, %c0_28] : memref<32x32xf32, #tpu.memory_space<vmem>>, vector<32x32xf32>
    %cst_29 = arith.constant dense<0.000000e+00> : vector<16x32xf32>
    %30 = tpu.matmul %28, %29, %cst_29 {dimension_numbers = #tpu.dot_dimension_numbers<[1], [0], [0], [1], [0, 0, 1, 1], [], []>} : vector<16x32xf32>, vector<32x32xf32>, vector<16x32xf32> -> vector<16x32xf32>
    %31 = vector.broadcast %5 : vector<1x32xf32> to vector<16x32xf32>
    %32 = arith.addf %30, %31 : vector<16x32xf32>
    %33 = arith.addf %0, %32 : vector<16x32xf32>
    %cst_30 = arith.constant dense<0.000000e+00> : vector<16xf32>
    %34 = vector.multi_reduction <add>, %33, %cst_30 [1] : vector<16x32xf32> to vector<16xf32>
    %35 = vector.shape_cast %34 : vector<16xf32> to vector<16x1xf32>
    %cst_31 = arith.constant 3.200000e+01 : f32
    %36 = vector.broadcast %cst_31 : f32 to vector<16x1xf32>
    %37 = arith.divf %35, %36 : vector<16x1xf32>
    %38 = vector.broadcast %37 : vector<16x1xf32> to vector<16x32xf32>
    %39 = arith.subf %33, %38 : vector<16x32xf32>
    %40 = arith.mulf %39, %39 : vector<16x32xf32>
    %cst_32 = arith.constant dense<0.000000e+00> : vector<16xf32>
    %41 = vector.multi_reduction <add>, %40, %cst_32 [1] : vector<16x32xf32> to vector<16xf32>
    %42 = vector.shape_cast %41 : vector<16xf32> to vector<16x1xf32>
    %cst_33 = arith.constant 3.200000e+01 : f32
    %43 = vector.broadcast %cst_33 : f32 to vector<16x1xf32>
    %44 = arith.divf %42, %43 : vector<16x1xf32>
    %cst_34 = arith.constant 9.99999974E-6 : f32
    %45 = vector.broadcast %cst_34 : f32 to vector<16x1xf32>
    %46 = arith.addf %44, %45 : vector<16x1xf32>
    %47 = math.rsqrt %46 : vector<16x1xf32>
    %48 = vector.broadcast %47 : vector<16x1xf32> to vector<16x32xf32>
    %49 = arith.mulf %39, %48 : vector<16x32xf32>
    %50 = vector.broadcast %6 : vector<1x32xf32> to vector<16x32xf32>
    %51 = arith.mulf %49, %50 : vector<16x32xf32>
    %52 = vector.broadcast %7 : vector<1x32xf32> to vector<16x32xf32>
    %53 = arith.addf %51, %52 : vector<16x32xf32>
    %c0_35 = arith.constant 0 : index
    %c0_36 = arith.constant 0 : index
    %54 = vector.load %arg14[%c0_35, %c0_36] : memref<16x32xf32, #tpu.memory_space<vmem>>, vector<16x32xf32>
    tpu.vector_store %arg14[%c0_35, %c0_36], %53 {strides = array<i32>} : memref<16x32xf32, #tpu.memory_space<vmem>>, vector<16x32xf32>,
    return
  }
  func.func @transform_0(%arg0: i32) -> (i32, i32) {
    %c0_i32 = arith.constant 0 : i32
    %c0_i32_0 = arith.constant 0 : i32
    return %arg0, %c0_i32 : i32, i32
  }
  func.func @transform_1(%arg0: i32) -> (i32, i32) {
    %c0_i32 = arith.constant 0 : i32
    %c0_i32_0 = arith.constant 0 : i32
    return %arg0, %c0_i32 : i32, i32
  }
  func.func @transform_2(%arg0: i32) -> (i32, i32) {
    %c0_i32 = arith.constant 0 : i32
    %c0_i32_0 = arith.constant 0 : i32
    %c0_i32_1 = arith.constant 0 : i32
    return %c0_i32, %c0_i32_0 : i32, i32
  }
  func.func @transform_3(%arg0: i32) -> (i32, i32) {
    %c0_i32 = arith.constant 0 : i32
    %c0_i32_0 = arith.constant 0 : i32
    %c0_i32_1 = arith.constant 0 : i32
    return %c0_i32, %c0_i32_0 : i32, i32
  }
  func.func @transform_4(%arg0: i32) -> (i32, i32) {
    %c0_i32 = arith.constant 0 : i32
    %c0_i32_0 = arith.constant 0 : i32
    %c0_i32_1 = arith.constant 0 : i32
    return %c0_i32, %c0_i32_0 : i32, i32
  }
  func.func @transform_5(%arg0: i32) -> (i32, i32) {
    %c0_i32 = arith.constant 0 : i32
    %c0_i32_0 = arith.constant 0 : i32
    %c0_i32_1 = arith.constant 0 : i32
    return %c0_i32, %c0_i32_0 : i32, i32
  }
  func.func @transform_6(%arg0: i32) -> (i32, i32) {
    %c0_i32 = arith.constant 0 : i32
    %c0_i32_0 = arith.constant 0 : i32
    %c0_i32_1 = arith.constant 0 : i32
    return %c0_i32, %c0_i32_0 : i32, i32
  }
  func.func @transform_7(%arg0: i32) -> (i32, i32) {
    %c0_i32 = arith.constant 0 : i32
    %c0_i32_0 = arith.constant 0 : i32
    %c0_i32_1 = arith.constant 0 : i32
    return %c0_i32, %c0_i32_0 : i32, i32
  }
  func.func @transform_8(%arg0: i32) -> (i32, i32) {
    %c0_i32 = arith.constant 0 : i32
    %c0_i32_0 = arith.constant 0 : i32
    %c0_i32_1 = arith.constant 0 : i32
    return %c0_i32, %c0_i32_0 : i32, i32
  }
  func.func @transform_9(%arg0: i32) -> (i32, i32) {
    %c0_i32 = arith.constant 0 : i32
    %c0_i32_0 = arith.constant 0 : i32
    %c0_i32_1 = arith.constant 0 : i32
    return %c0_i32, %c0_i32_0 : i32, i32
  }
  func.func @transform_10(%arg0: i32) -> (i32, i32) {
    %c0_i32 = arith.constant 0 : i32
    %c0_i32_0 = arith.constant 0 : i32
    %c0_i32_1 = arith.constant 0 : i32
    return %c0_i32, %c0_i32_0 : i32, i32
  }
  func.func @transform_11(%arg0: i32) -> (i32, i32) {
    %c0_i32 = arith.constant 0 : i32
    %c0_i32_0 = arith.constant 0 : i32
    %c0_i32_1 = arith.constant 0 : i32
    return %c0_i32, %c0_i32_0 : i32, i32
  }
  func.func @transform_12(%arg0: i32) -> (i32, i32) {
    %c0_i32 = arith.constant 0 : i32
    %c0_i32_0 = arith.constant 0 : i32
    %c0_i32_1 = arith.constant 0 : i32
    return %c0_i32, %c0_i32_0 : i32, i32
  }
  func.func @transform_13(%arg0: i32) -> (i32, i32) {
    %c0_i32 = arith.constant 0 : i32
    %c0_i32_0 = arith.constant 0 : i32
    return %arg0, %c0_i32 : i32, i32
  }
}

</mosaic_0001>

<bundles_post_ra>
// kernel: tpu_custom_call.1
= control target key start
LH: loop header
LB: loop body
LE: loop exit
PB: predicated region body
PF: predicated region fallthrough
CT: control target
= control target key end

     0   :  { %18 = vsyncpa [#allocation3], 0  ;;  %s1136_s0 = inlined_call_operand.hbm [shape: f32[16,32], index: 0, kind: input, shape index: {}]   ;;  %s1137_s1 = inlined_call_operand.hbm [shape: f32[16,48], index: 1, kind: input, shape index: {}]   ;;  %s1138_s2 = inlined_call_operand.vmem [shape: f32[32,32], index: 2, kind: input, shape index: {}]   ;;  %s1139_s3 = inlined_call_operand.vmem [shape: f32[1,32], index: 3, kind: input, shape index: {}]   ;;  %s1140_s4 = inlined_call_operand.vmem [shape: f32[48,32], index: 4, kind: input, shape index: {}]   ;;  %s1141_s5 = inlined_call_operand.vmem [shape: f32[1,32], index: 5, kind: input, shape index: {}]   ;;  %s1142_s6 = inlined_call_operand.vmem [shape: f32[32,32], index: 6, kind: input, shape index: {}]   ;;  %s1143_s7 = inlined_call_operand.vmem [shape: f32[32,32], index: 7, kind: input, shape index: {}]   ;;  %s1144_s8 = inlined_call_operand.vmem [shape: f32[1,32], index: 8, kind: input, shape index: {}]   ;;  %s1145_s9 = inlined_call_operand.hbm [shape: f32[32,32], index: 9, kind: input, shape index: {}]   ;;  %s1146_s10 = inlined_call_operand.vmem [shape: f32[1,32], index: 10, kind: input, shape index: {}]   ;;  %s1147_s11 = inlined_call_operand.vmem [shape: f32[1,32], index: 11, kind: input, shape index: {}]   ;;  %s1148_s12 = inlined_call_operand.vmem [shape: f32[1,32], index: 12, kind: input, shape index: {}]   ;;  %s1149_s13 = inlined_call_operand.hbm [shape: f32[16,32], index: 13, kind: output, shape index: {}]  }
   0x1   :  { %19 = vsyncpa [#allocation6], 0 }
   0x2   :  { %20 = vsyncpa [#allocation4], 0  ;;  %s897_s25 = smov [#allocation5]   ;;  %s898_s27 = smov [#allocation2]  }
   0x3   :  { %s38_s26 = sshll.u32 %s897_s25, 4  ;;  %s26_s28 = sshll.u32 %s898_s27, 4  ;;  %s39_s26 = int_to_ptr.vmem [resolvable:$true] %s38_s26  ;;  %s973_s28 = int_to_ptr.vmem [resolvable:$true] %s26_s28 }
   0x4   :  { %s803_s14 = scalar_lea.hbm %s1137_s1, 256 }
   0x5   :  { %p804_p0 = scmp.ne.s32.totalorder %s1137_s1, %s803_s14  ;;  %p807_p1 = scmp.lt.u32.totalorder %s803_s14, %s1137_s1 }
   0x7   :  { %p809_p2 = pnand %p807_p1, %p804_p0 }
   0x9   :  { %812 = shalt.err (!%p809_p2)
}
   0xa   :  { %s813_s19 = scalar_lea.vmem %s39_s26, 256  ;;  %p818_p4 = scmp.lt.s32.totalorder %s39_s26, %s39_s26 }
   0xb   :  { %p814_p3 = scmp.ne.s32.totalorder %s39_s26, %s813_s19  ;;  %p819_p5 = scmp.lt.s32.totalorder %s813_s19, %s813_s19 }
   0xd   :  { %p820_p6 = por %p819_p5, %p818_p4 }
   0xf   :  { %p821_p7 = pnand %p820_p6, %p814_p3 }
  0x11   :  { %824 = shalt.err (!%p821_p7)
}
  0x12   :  { %s899_s20 = smov 128   ;;  %s900_s21 = smov 8  }
  0x13   :  { %44 = dma.hbm_to_vmem [thread:$0]  %s1137_s1, 256, %s39_s26, [#allocation6], %s899_s20, %s899_s20, %s900_s21  }
  0x14   :  { %s825_s27 = scalar_lea.hbm %s1136_s0, 256 }
  0x15   :  { %p826_p8 = scmp.ne.s32.totalorder %s1136_s0, %s825_s27  ;;  %p829_p9 = scmp.lt.u32.totalorder %s825_s27, %s1136_s0 }
  0x17   :  { %p831_p10 = pnand %p829_p9, %p826_p8 }
  0x19   :  { %834 = shalt.err (!%p831_p10)
}
  0x1a   :  { %s835_s16 = scalar_lea.vmem %s973_s28, 256  ;;  %p840_p12 = scmp.lt.s32.totalorder %s973_s28, %s973_s28 }
  0x1b   :  { %p836_p11 = scmp.ne.s32.totalorder %s973_s28, %s835_s16  ;;  %p841_p13 = scmp.lt.s32.totalorder %s835_s16, %s835_s16 }
  0x1d   :  { %p842_p0 = por %p841_p13, %p840_p12 }
  0x1f   :  { %p843_p1 = pnand %p842_p0, %p836_p11 }
  0x21   :  { %846 = shalt.err (!%p843_p1)
}
  0x22   :  { %32 = dma.hbm_to_vmem [thread:$0]  %s1136_s0, 256, %s973_s28, [#allocation3], %s899_s20, %s899_s20, %s900_s21  }
  0x23   :  { %s901_s17 = smov [#allocation7]   ;;  %s847_s23 = scalar_lea.hbm %s1145_s9, 512 }
  0x24   :  { %s64_s18 = sshll.u32 %s901_s17, 4  ;;  %p848_p2 = scmp.ne.s32.totalorder %s1145_s9, %s847_s23  ;;  %s65_s18 = int_to_ptr.vmem [resolvable:$true] %s64_s18 }
  0x25   :  { %p851_p3 = scmp.lt.u32.totalorder %s847_s23, %s1145_s9 }
  0x27   :  { %p853_p4 = pnand %p851_p3, %p848_p2 }
  0x29   :  { %856 = shalt.err (!%p853_p4)
}
  0x2a   :  { %s857_s30 = scalar_lea.vmem %s65_s18, 512  ;;  %p862_p6 = scmp.lt.s32.totalorder %s65_s18, %s65_s18 }
  0x2b   :  { %p858_p5 = scmp.ne.s32.totalorder %s65_s18, %s857_s30  ;;  %p863_p7 = scmp.lt.s32.totalorder %s857_s30, %s857_s30 }
  0x2d   :  { %p864_p8 = por %p863_p7, %p862_p6 }
  0x2f   :  { %p865_p9 = pnand %p864_p8, %p858_p5 }
  0x31   :  { %868 = shalt.err (!%p865_p9)
}
  0x32   :  { %70 = dma.hbm_to_vmem [thread:$0]  %s1145_s9, 512, %s65_s18, [#allocation6], %s899_s20, %s899_s20, %s900_s21  }
  0x33   :  { %891 = dma.done.wait [#allocation3], 256  }
  0x34   :  { %892 = vsyncadd [#allocation3], 4294967040 }
  0x35   :  { %893 = dma.done.wait [#allocation6], 768  }
  0x36   :  { %894 = vsyncadd [#allocation6], 4294966528  ;;  %v188_v0 = vld [vmem:[%s1140_s4] sm:$0xff]  ;;  %v189_v1 = vld [vmem:[%s1140_s4 + $0x8] sm:$0xff]  ;;  %vm200_vm0 = vcmask 392192   ;;  %vm106_vm1 = vcmask 261120  }
  0x37   :  { %v190_v2 = vld [vmem:[%s1140_s4 + $0x10] sm:$0xff]  ;;  %v747_v3 = vpack.c.bf16 %v189_v1, %v188_v0  ;;  %v191_v4 = vld [vmem:[%s1140_s4 + $0x18] sm:$0xff]  ;;  %v192_v5 = vld [vmem:[%s1140_s4 + $0x20] sm:$0xff]  ;;  %s902_s1 = smov [#allocation8]  }
  0x38   :  { %v193_v6 = vld [vmem:[%s1140_s4 + $0x28] sm:$0xff]  ;;  %v751_v7 = vpack.c.bf16 %v191_v4, %v190_v2  ;;  %v96_v8 = vld [vmem:[%s1138_s2] sm:$0xff]  ;;  %v88_v10 = vld [vmem:[#allocation5] sm:$0xff]  ;;  %s617_s26 = sshll.u32 %s902_s1, 4  ;;  %s618_s26 = int_to_ptr.vmem [resolvable:$true] %s617_s26 }
  0x39   :  { %v97_v9 = vld [vmem:[%s1138_s2 + $0x8] sm:$0xff]  ;;  %748 = vmatprep.subr.bf16.mxu1 %v747_v3  ;;  %703 = vmatprep.mubr.msk.f32.mxu1 %vm200_vm0, %v88_v10  ;;  %v98_v12 = vld [vmem:[%s1138_s2 + $0x10] sm:$0xff]  ;;  %v99_v13 = vld [vmem:[%s1138_s2 + $0x18] sm:$0xff]  ;;  %v755_v17 = vpack.c.bf16 %v193_v6, %v192_v5  ;;  %s869_s2 = scalar_lea.vmem %s618_s26, 256  ;;  %p874_p11 = scmp.lt.s32.totalorder %s618_s26, %s618_s26 }
  0x3a   :  { %v739_v11 = vpack.c.bf16 %v97_v9, %v96_v8  ;;  %750 = vmatpush3.bf16.msra.mxu1 %v747_v3  ;;  %v743_v14 = vpack.c.bf16 %v99_v13, %v98_v12  ;;  %v1056_v15 = vld [vmem:[#allocation2] sm:$0xff]  ;;  %v287_v18 = vld [vmem:[%s1143_s7 + $0x8] sm:$0xff]  ;;  %v89_v21 = vld [vmem:[#allocation5 + $0x8] sm:$0xff]  ;;  %p870_p10 = scmp.ne.s32.totalorder %s618_s26, %s869_s2  ;;  %p875_p12 = scmp.lt.s32.totalorder %s869_s2, %s869_s2 }
  0x3b   :  { %v286_v16 = vld [vmem:[%s1143_s7] sm:$0xff]  ;;  %752 = vmatprep.subr.bf16.mxu1 %v751_v7  ;;  %688 = vmatprep.mubr.msk.f32.mxu0 %vm106_vm1, %v1056_v15  ;;  %v1066_v20 = vld [vmem:[#allocation2 + $0x8] sm:$0xff]  ;;  %v288_v22 = vld [vmem:[%s1143_s7 + $0x10] sm:$0xff] }
  0x3c   :  { %740 = vmatprep.subr.bf16.mxu0 %v739_v11  ;;  %v759_v19 = vpack.c.bf16 %v287_v18, %v286_v16  ;;  %v289_v23 = vld [vmem:[%s1143_s7 + $0x18] sm:$0xff]  ;;  %v282_v25 = vld [vmem:[%s1142_s6] sm:$0xff]  ;;  %v283_v26 = vld [vmem:[%s1142_s6 + $0x8] sm:$0xff]  ;;  %p876_p13 = por %p875_p12, %p874_p11 }
  0x3d   :  { %742 = vmatpush3.bf16.msra.mxu0 %v739_v11  ;;  %v763_v24 = vpack.c.bf16 %v289_v23, %v288_v22  ;;  %v767_v27 = vpack.c.bf16 %v283_v26, %v282_v25  ;;  %v633_v29 = vld [vmem:[%s1141_s5] ss:$0 sm:$0xff]  ;;  %v284_v33 = vld [vmem:[%s1142_s6 + $0x10] sm:$0xff]  ;;  %v285_v34 = vld [vmem:[%s1142_s6 + $0x18] sm:$0xff] }
  0x3e   :  { %744 = vmatprep.subr.bf16.mxu0 %v743_v14  ;;  %754 = vmatpush3.bf16.msra.mxu1 %v751_v7  ;;  %v630_v30 = vld [vmem:[%s1139_s3] ss:$0 sm:$0xff]  ;;  %v771_v39 = vpack.c.bf16 %v285_v34, %v284_v33  ;;  %v475_v42 = vld [vmem:[#allocation7 + $0x8] sm:$0xff]  ;;  %v476_v43 = vld [vmem:[#allocation7 + $0x10] sm:$0xff]  ;;  %p877_p0 = pnand %p876_p13, %p870_p10 }
  0x3f   :  { %756 = vmatprep.subr.bf16.mxu1 %v755_v17  ;;  %v474_v41 = vld [vmem:[#allocation7] sm:$0xff]  ;;  %v477_v45 = vld [vmem:[#allocation7 + $0x18] sm:$0xff] }
  0x40   :  { %v775_v44 = vpack.c.bf16 %v475_v42, %v474_v41  ;;  %v779_v46 = vpack.c.bf16 %v477_v45, %v476_v43  ;;  %v640_v47 = vld [vmem:[%s1144_s8] ss:$0 sm:$0xff] }
  0x41   :  { %746 = vmatpush3.bf16.msra.mxu0 %v743_v14  ;;  %v643_v62 = vld [vmem:[%s1146_s10] ss:$0 sm:$0xff] }
  0x42   :  { %760 = vmatprep.subr.bf16.mxu0 %v759_v19  ;;  %758 = vmatpush3.bf16.msra.mxu1 %v755_v17  ;;  %v647_v26 = vld [vmem:[%s1148_s12] ss:$0 sm:$0xff] }
  0x43   :  { %776 = vmatprep.subr.bf16.mxu1 %v775_v44 }
  0x44   :  { %689 = vmatmul.mubr.msk.f32.vlgmr.msra.gmra.mrb[0].mxu0 %vm106_vm1, %v1066_v20 }
  0x45   :  { %762 = vmatpush3.bf16.msra.mxu0 %v759_v19  ;;  %704 = vmatmul.mubr.msk.f32.vlgmr.msra.gmra.mrb[0].mxu1 %vm200_vm0, %v89_v21 }
  0x46   :  { %764 = vmatprep.subr.bf16.mxu0 %v763_v24  ;;  %778 = vmatpush3.bf16.msra.mxu1 %v775_v44 }
  0x47   :  { %780 = vmatprep.subr.bf16.mxu1 %v779_v46 }
  0x49   :  { %766 = vmatpush3.bf16.msra.mxu0 %v763_v24  ;;  %v646_v24 = vld [vmem:[%s1147_s11] ss:$0 sm:$0xff] }
  0x4a   :  { %768 = vmatprep.subr.bf16.mxu0 %v767_v27  ;;  %782 = vmatpush3.bf16.msra.mxu1 %v779_v46 }
 0x117   :  { %v690_v28 = vpop.f32.mrb[0].mxu0 }
 0x118   :  { %v179_v31 = vpop.f32.mrb[1].mxu0  ;;  %v705_v32 = vpop.f32.mrb[0].mxu1  ;;  %v185_v40 = vadd.f32 %v690_v28, %v630_v30 }
 0x119   :  { %v273_v35 = vpop.f32.mrb[1].mxu1  ;;  %v180_v37 = vadd.f32 %v630_v30, %v179_v31  ;;  %v279_v38 = vadd.f32 %v705_v32, %v633_v29 }
 0x11a   :  { %v274_v36 = vadd.f32 %v633_v29, %v273_v35 }
 0x11c   :  { %714 = vmatprep.mubr.msk.f32.mxu0 %vm106_vm1, %v274_v36 }
 0x11d   :  { %715 = vmatmul.mubr.msk.f32.vlgmr.msra.gmra.mrb[2].mxu0 %vm106_vm1, %v279_v38 }
 0x11e   :  { %770 = vmatpush3.bf16.msra.mxu0 %v767_v27  ;;  %725 = vmatprep.mubr.msk.f32.mxu0 %vm106_vm1, %v180_v37 }
 0x11f   :  { %772 = vmatprep.subr.bf16.mxu0 %v771_v39 }
 0x122   :  { %774 = vmatpush3.bf16.msra.mxu0 %v771_v39 }
 0x125   :  { %726 = vmatmul.mubr.msk.f32.vlgmr.msra.gmra.mrb[2].mxu0 %vm106_vm1, %v185_v40 }
 0x1f8   :  { %v727_v48 = vpop.f32.mrb[2].mxu0 }
 0x1f9   :  { %v459_v49 = vadd.f32 %v727_v48, %v640_v47  ;;  %v443_v50 = vpop.f32.mrb[3].mxu0 }
 0x1fa   :  { %v458_v51 = vadd.f32 %v640_v47, %v443_v50 }
 0x1fb   :  { %v642_v52 = vmul.f32 -1.442695, %v459_v49 }
 0x1fc   :  { %v641_v53 = vmul.f32 -1.442695, %v458_v51 }
 0x1fd   :  { %791 = vpow2.f32 %v642_v52 }
 0x1fe   :  { %793 = vpow2.f32 %v641_v53 }
 0x207   :  { %v792_v54 = vpop.eup %791 }
 0x208   :  { %v794_v55 = vpop.eup %793  ;;  %v467_v56 = vadd.f32 1.0, %v792_v54 }
 0x209   :  { %v466_v57 = vadd.f32 1.0, %v794_v55 }
 0x20a   :  { %795 = vrcp.f32 %v467_v56 }
 0x20b   :  { %797 = vrcp.f32 %v466_v57 }
 0x214   :  { %v796_v58 = vpop.eup %795 }
 0x215   :  { %v798_v59 = vpop.eup %797  ;;  %v473_v61 = vmul.f32 %v796_v58, %v279_v38 }
 0x216   :  { %v472_v60 = vmul.f32 %v798_v59, %v274_v36 }
 0x218   :  { %736 = vmatprep.mubr.msk.f32.mxu1 %vm106_vm1, %v472_v60 }
 0x219   :  { %737 = vmatmul.mubr.msk.f32.vlgmr.msra.gmra.mrb[2].mxu1 %vm106_vm1, %v473_v61 }
 0x2ec   :  { %v738_v63 = vpop.f32.mrb[2].mxu1 }
 0x2ed   :  { %v556_v0 = vpop.f32.mrb[3].mxu1  ;;  %v562_v1 = vadd.f32 %v738_v63, %v643_v62 }
 0x2ee   :  { %v557_v2 = vadd.f32 %v643_v62, %v556_v0 }
 0x2ef   :  { %v566_v5 = vadd.f32 %v562_v1, %v1066_v20 }
 0x2f0   :  { %v565_v3 = vadd.f32 %v557_v2, %v1056_v15 }
 0x2f1   :  { %v570_v6 = vsel %vm106_vm1, %v566_v5, 0.0 }
 0x2f2   :  { %v567_v4 = vsel %vm106_vm1, %v565_v3, 0.0 }
 0x2f3   :  { %568 = vadd.xlane.f32.xlu0 %v567_v4 }
 0x2f7   :  { %571 = vadd.xlane.f32.xlu0 %v570_v6 }
 0x380   :  { %v569_v7 = vpop.xlane.xlu0 %568 }
 0x381   :  { %v574_v8 = vmul.f32 0.03125, %v569_v7 }
 0x383   :  { %v576_v9 = vsub.f32 %v565_v3, %v574_v8 }
 0x384   :  { %v572_v10 = vpop.xlane.xlu0 %571 }
 0x385   :  { %v575_v11 = vmul.f32 0.03125, %v572_v10  ;;  %v578_v12 = vmul.f32 %v576_v9, %v576_v9 }
 0x387   :  { %v577_v13 = vsub.f32 %v566_v5, %v575_v11  ;;  %v580_v14 = vsel %vm106_vm1, %v578_v12, 0.0 }
 0x388   :  { %581 = vadd.xlane.f32.xlu1 %v580_v14 }
 0x389   :  { %v579_v16 = vmul.f32 %v577_v13, %v577_v13 }
 0x38b   :  { %v583_v15 = vsel %vm106_vm1, %v579_v16, 0.0 }
 0x38c   :  { %584 = vadd.xlane.f32.xlu1 %v583_v15 }
 0x415   :  { %v582_v17 = vpop.xlane.xlu1 %581 }
 0x416   :  { %v586_v18 = vmul.f32 0.03125, %v582_v17 }
 0x418   :  { %v588_v19 = vadd.f32 1e-05, %v586_v18 }
 0x419   :  { %v585_v20 = vpop.xlane.xlu1 %584 }
 0x41a   :  { %799 = vrsqrt.f32 %v588_v19  ;;  %v587_v21 = vmul.f32 0.03125, %v585_v20 }
 0x41c   :  { %v589_v22 = vadd.f32 1e-05, %v587_v21 }
 0x41e   :  { %801 = vrsqrt.f32 %v589_v22 }
 0x424   :  { %v800_v23 = vpop.eup %799 }
 0x425   :  { %v592_v25 = vmul.f32 %v800_v23, %v576_v9 }
 0x427   :  { %v600_v27 = vmul.f32 %v646_v24, %v592_v25 }
 0x428   :  { %v802_v28 = vpop.eup %801 }
 0x429   :  { %v593_v29 = vmul.f32 %v802_v28, %v577_v13  ;;  %v608_v30 = vadd.f32 %v647_v26, %v600_v27 }
 0x42b   :  { %v601_v31 = vmul.f32 %v646_v24, %v593_v29  ;;  %610 = vst.msk [vmem:[#allocation8] sm:$0xff] %vm106_vm1, %v608_v30 }
 0x42d   :  { %v609_v32 = vadd.f32 %v647_v26, %v601_v31 }
 0x42f   :  { %611 = vst.msk [vmem:[#allocation8 + $0x8] sm:$0xff] %vm106_vm1, %v609_v32 }
 0x430   :  { %880 = shalt.err (!%p877_p0)
}
 0x431   :  { %s881_s17 = scalar_lea.hbm %s1149_s13, 256 }
 0x432   :  { %p882_p1 = scmp.ne.s32.totalorder %s1149_s13, %s881_s17  ;;  %p885_p2 = scmp.lt.u32.totalorder %s881_s17, %s1149_s13 }
 0x434   :  { %p887_p3 = pnand %p885_p2, %p882_p1 }
 0x436   :  { %890 = shalt.err (!%p887_p3)
}
 0x437   :  { %623 = dma.vmem_to_hbm [thread:$0]  %s618_s26, 256, %s1149_s13, [#allocation4], %s899_s20, %s899_s20, %s900_s21  }
 0x438   :  { %895 = dma.done.wait [#allocation4], 256  }
 0x439   :  { %896 = vsyncadd [#allocation4], 4294967040 }
 0x43a   :  { %627 = vsyncpa [#allocation3], 1 }
 0x43b   :  { %628 = vsyncpa [#allocation6], 1 }
 0x43c   :  { %629 = vsyncpa [#allocation4], 1 }

</bundles_post_ra>
